<compile_context>
chip_gen: v6e
topology: v6e:2x2x1
jax: 0.10.0
libtpu: 0.0.40
codegen_flags: <defaults>
</compile_context>

<pallas_src>
import functools

import jax
import jax.numpy as jnp
from jax.experimental import pallas as pl
from jax.experimental.pallas import tpu as pltpu

DROPOUT = 0.2


def _round_up(x, m):
    return ((x + m - 1) // m) * m


def _pick_hidden_tile(H, target):
    """Largest multiple of 128 <= target that divides H, else the full H."""
    if H <= target:
        return H
    t = (target // 128) * 128
    while t >= 128:
        if H % t == 0:
            return t
        t -= 128
    return H


# ----------------------------- kernels -------------------------------------


def ffn_fused_kernel(*refs, training, keep_threshold, inv_keep):
    """Single-pass body: weights fully resident, whole FFN fused per row tile."""
    if training:
        x_ref, w1_ref, b1_ref, w2_ref, b2_ref, bits_ref, o_ref = refs
    else:
        x_ref, w1_ref, b1_ref, w2_ref, b2_ref, o_ref = refs

    # Linear 1 (bf16 operands, f32 accumulation) + bias + ReLU.
    h = jnp.dot(x_ref[...], w1_ref[...], preferred_element_type=jnp.float32)
    h = jnp.maximum(h + b1_ref[...], 0.0)

    # Linear 2 + bias.
    y = jnp.dot(h.astype(w2_ref.dtype), w2_ref[...],
                preferred_element_type=jnp.float32) + b2_ref[...]

    if training:
        # Integer-domain inverted dropout: keep iff bits >= p * 2^32.
        keep = bits_ref[...] >= jnp.uint32(keep_threshold)
        y = jnp.where(keep, y * inv_keep, 0.0)

    o_ref[...] = y.astype(o_ref.dtype)


def ffn_tiled_kernel(*refs, training, keep_threshold, inv_keep):
    """Hidden-tiled body: f32 accumulator in VMEM, finalize on last h step."""
    if training:
        (x_ref, w1_ref, b1_ref, w2_ref, b2_ref, bits_ref,
         o_ref, acc_ref) = refs
    else:
        x_ref, w1_ref, b1_ref, w2_ref, b2_ref, o_ref, acc_ref = refs

    h_step = pl.program_id(1)

    @pl.when(h_step == 0)
    def _():
        acc_ref[...] = jnp.zeros_like(acc_ref)

    # Linear 1 on this hidden tile + ReLU.
    h = jnp.dot(x_ref[...], w1_ref[...], preferred_element_type=jnp.float32)
    h = jnp.maximum(h + b1_ref[...], 0.0)

    # Partial Linear 2: accumulate the (tm, E) output tile in f32 scratch.
    acc_ref[...] += jnp.dot(h.astype(w2_ref.dtype), w2_ref[...],
                            preferred_element_type=jnp.float32)

    @pl.when(h_step == pl.num_programs(1) - 1)
    def _():
        y = acc_ref[...] + b2_ref[...]
        if training:
            keep = bits_ref[...] >= jnp.uint32(keep_threshold)
            y = jnp.where(keep, y * inv_keep, 0.0)
        o_ref[...] = y.astype(o_ref.dtype)


# ----------------------------- wrapper --------------------------------------


def prepare_ffn_params(w1, b1, w2, b2, compute_dtype=jnp.bfloat16):
    """One-time prep: PyTorch (out, in) weights -> (in, out) layout + cast."""
    w1t = jnp.transpose(w1).astype(compute_dtype)   # (E, H)
    w2t = jnp.transpose(w2).astype(compute_dtype)   # (H, E)
    b1r = b1.reshape(1, -1).astype(jnp.float32)     # (1, H)
    b2r = b2.reshape(1, -1).astype(jnp.float32)     # (1, E)
    return w1t, b1r, w2t, b2r


def feed_forward(x, params, *, training=False, dropout_p=DROPOUT,
                 rng_key=None, tm=256, th=512, force_tiled=False,
                 max_resident_weight_bytes=8 * 1024 * 1024):
    """x: (B, T, E).  params: output of prepare_ffn_params."""
    w1t, b1r, w2t, b2r = params
    B, T, E = x.shape
    E_in, H = w1t.shape
    assert E_in == E and w2t.shape == (H, E)
    M = B * T

    compute_dtype = w1t.dtype
    xf = x.reshape(M, E).astype(compute_dtype)

    # Row tile: MXU-matched by default, clamped for tiny inputs and padded so
    # the grid divides evenly (pad rows are sliced off afterwards).
    tm = max(16, min(tm, _round_up(M, 16)))
    M_pad = _round_up(M, tm)
    if M_pad != M:
        xf = jnp.pad(xf, ((0, M_pad - M), (0, 0)))

    is_training = bool(training) and dropout_p > 0.0
    keep_threshold = 0
    inv_keep = 1.0
    bits = None
    if is_training:
        if rng_key is None:
            raise ValueError("training=True requires rng_key")
        bits = jax.random.bits(rng_key, (M_pad, E), dtype=jnp.uint32)
        keep_threshold = min(int(round(dropout_p * 2.0 ** 32)), 2 ** 32 - 1)
        inv_keep = 1.0 / (1.0 - dropout_p)

    weight_bytes = 2 * E * H * jnp.dtype(compute_dtype).itemsize  # W1 + W2
    use_fast = (not force_tiled) and (weight_bytes <= max_resident_weight_bytes)

    if use_fast:
        # ----- FAST path: weights resident (constant index_map), 1-D grid ----
        grid = (M_pad // tm,)
        in_specs = [
            pl.BlockSpec((tm, E), lambda m: (m, 0)),   # x rows
            pl.BlockSpec((E, H),  lambda m: (0, 0)),   # W1^T (resident)
            pl.BlockSpec((1, H),  lambda m: (0, 0)),   # b1   (resident)
            pl.BlockSpec((H, E),  lambda m: (0, 0)),   # W2^T (resident)
            pl.BlockSpec((1, E),  lambda m: (0, 0)),   # b2   (resident)
        ]
        inputs = [xf, w1t, b1r, w2t, b2r]
        if is_training:
            in_specs.append(pl.BlockSpec((tm, E), lambda m: (m, 0)))
            inputs.append(bits)

        kernel = functools.partial(ffn_fused_kernel, training=is_training,
                                   keep_threshold=keep_threshold,
                                   inv_keep=inv_keep)
        out = pl.pallas_call(
            kernel,
            out_shape=jax.ShapeDtypeStruct((M_pad, E), x.dtype),
            grid_spec=pltpu.PrefetchScalarGridSpec(
                num_scalar_prefetch=0,
                grid=grid,
                in_specs=in_specs,
                out_specs=pl.BlockSpec((tm, E), lambda m: (m, 0)),
            ),
            compiler_params=pltpu.CompilerParams(
                dimension_semantics=("parallel",)),
        )(*inputs)
    else:
        # ----- TILED path: hidden axis last ("arbitrary"), f32 accumulator ---
        th = _pick_hidden_tile(H, th)
        grid = (M_pad // tm, H // th)
        in_specs = [
            pl.BlockSpec((tm, E), lambda m, h: (m, 0)),   # x rows
            pl.BlockSpec((E, th), lambda m, h: (0, h)),   # W1^T hidden tile
            pl.BlockSpec((1, th), lambda m, h: (0, h)),   # b1 hidden tile
            pl.BlockSpec((th, E), lambda m, h: (h, 0)),   # W2^T hidden tile
            pl.BlockSpec((1, E),  lambda m, h: (0, 0)),   # b2 (resident)
        ]
        inputs = [xf, w1t, b1r, w2t, b2r]
        if is_training:
            in_specs.append(pl.BlockSpec((tm, E), lambda m, h: (m, 0)))
            inputs.append(bits)

        kernel = functools.partial(ffn_tiled_kernel, training=is_training,
                                   keep_threshold=keep_threshold,
                                   inv_keep=inv_keep)
        out = pl.pallas_call(
            kernel,
            out_shape=jax.ShapeDtypeStruct((M_pad, E), x.dtype),
            grid_spec=pltpu.PrefetchScalarGridSpec(
                num_scalar_prefetch=0,
                grid=grid,
                in_specs=in_specs,
                out_specs=pl.BlockSpec((tm, E), lambda m, h: (m, 0)),
                scratch_shapes=[pltpu.VMEM((tm, E), jnp.float32)],
            ),
            compiler_params=pltpu.CompilerParams(
                dimension_semantics=("parallel", "arbitrary")),
        )(*inputs)

    return out[:M].reshape(B, T, E)


# ----------------------------- test harness ---------------------------------


def _init_params(key, n_embed):
    """Init mimicking PyTorch nn.Linear default U[-1/sqrt(fan_in), +)."""
    hidden = 4 * n_embed
    k1, k2, k3, k4 = jax.random.split(key, 4)
    bound1 = 1.0 / (n_embed ** 0.5)
    bound2 = 1.0 / (hidden ** 0.5)
    w1 = jax.random.uniform(k1, (hidden, n_embed), jnp.float32, -bound1, bound1)
    b1 = jax.random.uniform(k2, (hidden,),         jnp.float32, -bound1, bound1)
    w2 = jax.random.uniform(k3, (n_embed, hidden), jnp.float32, -bound2, bound2)
    b2 = jax.random.uniform(k4, (n_embed,),        jnp.float32, -bound2, bound2)
    return w1, b1, w2, b2


def _reference_eval(x, params):
    """Pure-JAX reference using the same bf16-operand / f32-accumulate recipe."""
    w1t, b1r, w2t, b2r = params
    B, T, E = x.shape
    xf = x.reshape(-1, E).astype(w1t.dtype)
    h = jnp.dot(xf, w1t, preferred_element_type=jnp.float32) + b1r
    h = jnp.maximum(h, 0.0)
    y = jnp.dot(h.astype(w2t.dtype), w2t,
                preferred_element_type=jnp.float32) + b2r
    return y.reshape(B, T, E).astype(x.dtype)


if __name__ == "__main__":
    # ----- config matching the module: hidden = 4 * n_embed -----------------
    B, T, n_embed = 2, 8, 32            # hidden = 128
    key = jax.random.PRNGKey(0)
    kx, kp, kd, kx2, kp2 = jax.random.split(key, 5)
    x = jax.random.normal(kx, (B, T, n_embed), dtype=jnp.float32)
    w1, b1, w2, b2 = _init_params(kp, n_embed)

    # One-time layout / dtype prep (outside the hot path).
    params = prepare_ffn_params(w1, b1, w2, b2, compute_dtype=jnp.bfloat16)

    # --- Eval-mode forward (fast fused path; dropout == identity). ----------
    y = jax.block_until_ready(feed_forward(x, params, training=False))
    y_ref = _reference_eval(x, params)
    assert y.shape == (B, T, n_embed)
    assert jnp.allclose(y, y_ref, atol=1e-3, rtol=1e-3), "mismatch vs reference"

    # --- Training-mode forward: integer-threshold dropout. ------------------
    y_train = jax.block_until_ready(
        feed_forward(x, params, training=True, rng_key=kd))
    assert y_train.shape == (B, T, n_embed)
    dropped = (y_train == 0.0)
    frac = float(jnp.mean(dropped.astype(jnp.float32)))
    assert 0.02 < frac < 0.6, f"unexpected dropout fraction {frac}"
    scaled_ref = y_ref / (1.0 - DROPOUT)
    assert jnp.allclose(jnp.where(dropped, 0.0, y_train),
                        jnp.where(dropped, 0.0, scaled_ref),
                        atol=1e-3, rtol=1e-3), "dropout-kept values mismatch"

    # --- Also exercise the hidden-tiled fallback path (forced). -------------
    n_embed2 = 64                        # hidden = 256, tiled as 2 x 128
    x2 = jax.random.normal(kx2, (B, T, n_embed2), dtype=jnp.float32)
    params2 = prepare_ffn_params(*_init_params(kp2, n_embed2))
    y2 = jax.block_until_ready(
        feed_forward(x2, params2, training=False, force_tiled=True, th=128))
    y2_ref = _reference_eval(x2, params2)
    assert jnp.allclose(y2, y2_ref, atol=1e-3, rtol=1e-3), "tiled path mismatch"

    print("KERNEL_OK")
</pallas_src>

<mosaic_0001>
module attributes {stable_mosaic.version = 11 : i64} {
  func.func @ffn_fused_kernel(%arg0: i32, %arg1: memref<16x32xbf16, #tpu.memory_space<vmem>>, %arg2: memref<32x128xbf16, #tpu.memory_space<vmem>>, %arg3: memref<1x128xf32, #tpu.memory_space<vmem>>, %arg4: memref<128x32xbf16, #tpu.memory_space<vmem>>, %arg5: memref<1x32xf32, #tpu.memory_space<vmem>>, %arg6: memref<16x32xf32, #tpu.memory_space<vmem>>) attributes {dimension_semantics = [#tpu.dimension_semantics<parallel>], iteration_bounds = array<i64: 1>, scalar_prefetch = 0 : i64, scratch_operands = 0 : i64, tpu.core_type = #tpu.core_type<tc>, window_params = [{transform_indices = @transform_0, window_bounds = array<i64: 16, 32>}, {pipeline_mode = #tpu.pipeline_mode<synchronous>, transform_indices = @transform_1, window_bounds = array<i64: 32, 128>}, {pipeline_mode = #tpu.pipeline_mode<synchronous>, transform_indices = @transform_2, window_bounds = array<i64: 1, 128>}, {pipeline_mode = #tpu.pipeline_mode<synchronous>, transform_indices = @transform_3, window_bounds = array<i64: 128, 32>}, {pipeline_mode = #tpu.pipeline_mode<synchronous>, transform_indices = @transform_4, window_bounds = array<i64: 1, 32>}, {transform_indices = @transform_5, window_bounds = array<i64: 16, 32>}]} {
    %c0 = arith.constant 0 : index
    %c0_0 = arith.constant 0 : index
    %0 = vector.load %arg1[%c0, %c0_0] : memref<16x32xbf16, #tpu.memory_space<vmem>>, vector<16x32xbf16>
    %c0_1 = arith.constant 0 : index
    %c0_2 = arith.constant 0 : index
    %1 = vector.load %arg2[%c0_1, %c0_2] : memref<32x128xbf16, #tpu.memory_space<vmem>>, vector<32x128xbf16>
    %cst = arith.constant dense<0.000000e+00> : vector<16x128xf32>
    %2 = tpu.matmul %0, %1, %cst {dimension_numbers = #tpu.dot_dimension_numbers<[1], [0], [0], [1], [0, 0, 1, 1], [], []>} : vector<16x32xbf16>, vector<32x128xbf16>, vector<16x128xf32> -> vector<16x128xf32>
    %c0_3 = arith.constant 0 : index
    %c0_4 = arith.constant 0 : index
    %3 = vector.load %arg3[%c0_3, %c0_4] : memref<1x128xf32, #tpu.memory_space<vmem>>, vector<1x128xf32>
    %4 = vector.broadcast %3 : vector<1x128xf32> to vector<16x128xf32>
    %5 = arith.addf %2, %4 : vector<16x128xf32>
    %cst_5 = arith.constant 0.000000e+00 : f32
    %6 = vector.broadcast %cst_5 : f32 to vector<16x128xf32>
    %7 = arith.maximumf %5, %6 : vector<16x128xf32>
    %8 = arith.truncf %7 : vector<16x128xf32> to vector<16x128xbf16>
    %c0_6 = arith.constant 0 : index
    %c0_7 = arith.constant 0 : index
    %9 = vector.load %arg4[%c0_6, %c0_7] : memref<128x32xbf16, #tpu.memory_space<vmem>>, vector<128x32xbf16>
    %cst_8 = arith.constant dense<0.000000e+00> : vector<16x32xf32>
    %10 = tpu.matmul %8, %9, %cst_8 {dimension_numbers = #tpu.dot_dimension_numbers<[1], [0], [0], [1], [0, 0, 1, 1], [], []>} : vector<16x128xbf16>, vector<128x32xbf16>, vector<16x32xf32> -> vector<16x32xf32>
    %c0_9 = arith.constant 0 : index
    %c0_10 = arith.constant 0 : index
    %11 = vector.load %arg5[%c0_9, %c0_10] : memref<1x32xf32, #tpu.memory_space<vmem>>, vector<1x32xf32>
    %12 = vector.broadcast %11 : vector<1x32xf32> to vector<16x32xf32>
    %13 = arith.addf %10, %12 : vector<16x32xf32>
    %c0_11 = arith.constant 0 : index
    %c0_12 = arith.constant 0 : index
    %14 = vector.load %arg6[%c0_11, %c0_12] : memref<16x32xf32, #tpu.memory_space<vmem>>, vector<16x32xf32>
    tpu.vector_store %arg6[%c0_11, %c0_12], %13 {strides = array<i32>} : memref<16x32xf32, #tpu.memory_space<vmem>>, vector<16x32xf32>,
    return
  }
  func.func @transform_0(%arg0: i32) -> (i32, i32) {
    %c0_i32 = arith.constant 0 : i32
    %c0_i32_0 = arith.constant 0 : i32
    return %arg0, %c0_i32 : i32, i32
  }
  func.func @transform_1(%arg0: i32) -> (i32, i32) {
    %c0_i32 = arith.constant 0 : i32
    %c0_i32_0 = arith.constant 0 : i32
    %c0_i32_1 = arith.constant 0 : i32
    return %c0_i32, %c0_i32_0 : i32, i32
  }
  func.func @transform_2(%arg0: i32) -> (i32, i32) {
    %c0_i32 = arith.constant 0 : i32
    %c0_i32_0 = arith.constant 0 : i32
    %c0_i32_1 = arith.constant 0 : i32
    return %c0_i32, %c0_i32_0 : i32, i32
  }
  func.func @transform_3(%arg0: i32) -> (i32, i32) {
    %c0_i32 = arith.constant 0 : i32
    %c0_i32_0 = arith.constant 0 : i32
    %c0_i32_1 = arith.constant 0 : i32
    return %c0_i32, %c0_i32_0 : i32, i32
  }
  func.func @transform_4(%arg0: i32) -> (i32, i32) {
    %c0_i32 = arith.constant 0 : i32
    %c0_i32_0 = arith.constant 0 : i32
    %c0_i32_1 = arith.constant 0 : i32
    return %c0_i32, %c0_i32_0 : i32, i32
  }
  func.func @transform_5(%arg0: i32) -> (i32, i32) {
    %c0_i32 = arith.constant 0 : i32
    %c0_i32_0 = arith.constant 0 : i32
    return %arg0, %c0_i32 : i32, i32
  }
}

</mosaic_0001>

<bundles_post_ra>
// kernel: tpu_custom_call.1
= control target key start
LH: loop header
LB: loop body
LE: loop exit
PB: predicated region body
PF: predicated region fallthrough
CT: control target
= control target key end

     0   :  { %v322_v1 = vmov 0.0   ;;  %vm323_vm0 = vmmov 0   ;;  %vm52_vm1 = vcmask 261120   ;;  %s402_s0 = inlined_call_operand.vmem [shape: bf16[16,32], index: 0, kind: input, shape index: {}]   ;;  %s403_s1 = inlined_call_operand.vmem [shape: bf16[32,128], index: 1, kind: input, shape index: {}]   ;;  %s404_s2 = inlined_call_operand.vmem [shape: f32[1,128], index: 2, kind: input, shape index: {}]   ;;  %s405_s3 = inlined_call_operand.vmem [shape: bf16[128,32], index: 3, kind: input, shape index: {}]   ;;  %s406_s4 = inlined_call_operand.vmem [shape: f32[1,32], index: 4, kind: input, shape index: {}]   ;;  %s407_s5 = inlined_call_operand.hbm [shape: f32[16,32], index: 5, kind: output, shape index: {}]  }
   0x1   :  { %v289_v0 = vld [vmem:[%s403_s1 + $0x8] sm:$0xff]   ;;  %256 = vmatprep.subr.bf16.mxu0 %v322_v1  ;;  %264 = vmatprep.subr.bf16.mxu1 %v322_v1  ;;  %v290_v2 = vld [vmem:[%s403_s1] sm:$0xff]   ;;  %v292_v3 = vld [vmem:[%s405_s3 + $0x38] sm:$0xff]  }
   0x2   :  { %257 = vmatpush3.bf16.msra.mxu0 %v289_v0  ;;  %260 = vmatprep.mubr.msk.bf16.mxu0 %vm323_vm0, %v322_v1  ;;  %v291_v4 = vld [vmem:[%s402_s0] sm:$0xff]   ;;  %v293_v5 = vld [vmem:[%s405_s3 + $0x30] sm:$0xff]   ;;  %v294_v6 = vld [vmem:[%s405_s3 + $0x28] sm:$0xff]  }
   0x3   :  { %258 = vmatprep.subr.bf16.mxu0 %v322_v1  ;;  %280 = vmatprep.mubr.msk.bf16.mxu1 %vm323_vm0, %v322_v1 }
   0x4   :  { %265 = vmatpush3.bf16.msra.mxu1 %v292_v3 }
   0x5   :  { %266 = vmatprep.subr.bf16.mxu1 %v322_v1 }
   0x6   :  { %259 = vmatpush3.bf16.msra.mxu0 %v290_v2 }
   0x8   :  { %267 = vmatpush3.bf16.msra.mxu1 %v293_v5 }
   0x9   :  { %261 = vmatmul.mubr.msk.bf16.vlgmr.msra.gmra.mxu0 %vm52_vm1, %v291_v4  ;;  %268 = vmatprep.subr.bf16.mxu1 %v322_v1 }
   0xa   :  { %10 = vsyncpa [#allocation3], 0  ;;  %v295_v7 = vld [vmem:[%s405_s3 + $0x20] sm:$0xff]   ;;  %v296_v8 = vld [vmem:[%s405_s3 + $0x18] sm:$0xff]  }
   0xb   :  { %v297_v9 = vld [vmem:[%s405_s3 + $0x10] sm:$0xff]   ;;  %v298_v10 = vld [vmem:[%s405_s3 + $0x8] sm:$0xff]   ;;  %v299_v11 = vld [vmem:[%s405_s3] sm:$0xff]   ;;  %s324_s3 = smov [#allocation2]  }
   0xc   :  { %269 = vmatpush3.bf16.msra.mxu1 %v294_v6  ;;  %v230_v12 = vld [vmem:[%s404_s2] ss:$0 sm:$0xff]  ;;  %s219_s17 = sshll.u32 %s324_s3, 4  ;;  %s220_s17 = int_to_ptr.vmem [resolvable:$true] %s219_s17 }
   0xd   :  { %270 = vmatprep.subr.bf16.mxu1 %v322_v1  ;;  %v235_v22 = vld [vmem:[%s406_s4] ss:$0 sm:$0xff]  ;;  %s300_s2 = scalar_lea.vmem %s220_s17, 256  ;;  %p305_p1 = scmp.lt.s32.totalorder %s220_s17, %s220_s17 }
   0xe   :  { %p301_p0 = scmp.ne.s32.totalorder %s220_s17, %s300_s2  ;;  %p306_p2 = scmp.lt.s32.totalorder %s300_s2, %s300_s2 }
  0x10   :  { %271 = vmatpush3.bf16.msra.mxu1 %v295_v7  ;;  %p307_p3 = por %p306_p2, %p305_p1 }
  0x11   :  { %272 = vmatprep.subr.bf16.mxu1 %v322_v1 }
  0x12   :  { %p308_p4 = pnand %p307_p3, %p301_p0 }
  0x14   :  { %273 = vmatpush3.bf16.msra.mxu1 %v296_v8 }
  0x15   :  { %274 = vmatprep.subr.bf16.mxu1 %v322_v1 }
  0x18   :  { %275 = vmatpush3.bf16.msra.mxu1 %v297_v9 }
  0x19   :  { %276 = vmatprep.subr.bf16.mxu1 %v322_v1 }
  0x1c   :  { %277 = vmatpush3.bf16.msra.mxu1 %v298_v10 }
  0x1d   :  { %278 = vmatprep.subr.bf16.mxu1 %v322_v1 }
  0x20   :  { %279 = vmatpush3.bf16.msra.mxu1 %v299_v11 }
  0xc9   :  { %v90_v13 = vpop.f32.mrf.mxu0 }
  0xca   :  { %v91_v15 = vadd.f32 %v230_v12, %v90_v13 }
  0xcb   :  { %v262_v14 = vpop.f32.mrf.mxu0 }
  0xcc   :  { %v97_v19 = vmax.f32 %v91_v15, 0.0 }
  0xcd   :  { %v93_v16 = vpop.f32.mrf.mxu0 }
  0xce   :  { %v94_v17 = vadd.f32 %v230_v12, %v93_v16 }
  0xcf   :  { %v263_v18 = vpop.f32.mrf.mxu0 }
  0xd0   :  { %v98_v20 = vmax.f32 %v94_v17, 0.0 }
  0xd2   :  { %v99_v21 = vpack.c.bf16 %v98_v20, %v97_v19 }
  0xd4   :  { %281 = vmatmul.mubr.bf16.vlgmr.msra.gmra.mxu1 %v99_v21 }
 0x194   :  { %v205_v23 = vpop.f32.mrf.mxu1 }
 0x195   :  { %v206_v24 = vadd.f32 %v235_v22, %v205_v23 }
 0x196   :  { %v282_v25 = vpop.f32.mrf.mxu1 }
 0x197   :  { %212 = vst.msk [vmem:[#allocation2] sm:$0xff] %vm52_vm1, %v206_v24 }
 0x198   :  { %v208_v26 = vpop.f32.mrf.mxu1 }
 0x199   :  { %v209_v27 = vadd.f32 %v235_v22, %v208_v26 }
 0x19a   :  { %v283_v28 = vpop.f32.mrf.mxu1 }
 0x19b   :  { %213 = vst.msk [vmem:[#allocation2 + $0x8] sm:$0xff] %vm52_vm1, %v209_v27 }
 0x19c   :  { %311 = shalt.err (!%p308_p4)
}
 0x19d   :  { %s325_s4 = smov 128   ;;  %s326_s18 = smov 8  }
 0x19e   :  { %225 = dma.vmem_to_hbm [thread:$0]  %s220_s17, 256, %s407_s5, [#allocation3], %s325_s4, %s325_s4, %s326_s18  }
 0x19f   :  { %320 = dma.done.wait [#allocation3], 256  }
 0x1a0   :  { %321 = vsyncadd [#allocation3], 4294967040 }
 0x1a1   :  { %229 = vsyncpa [#allocation3], 1 }

</bundles_post_ra>
